<compile_context>
chip_gen: v7x
topology: tpu7x:2x2x1
jax: 0.10.0
libtpu: 0.0.40
codegen_flags: <defaults>
</compile_context>

<pallas_src>
import jax
import jax.numpy as jnp
import numpy as np
from jax.experimental import pallas as pl
from jax.experimental.pallas import tpu as pltpu

KSIZE = 5
DILATIONS = (1, 2)
BN_EPS = 1e-5


def _fold_bn(gamma, beta, running_mean, running_var, eps=BN_EPS):
    scale = gamma / jnp.sqrt(running_var + eps)
    shift = beta - running_mean * scale
    return scale, shift


def make_params(key, in_ch, out_ch, K=KSIZE, dilations=DILATIONS):
    """Deterministic synthetic parameters, with all BatchNorms folded (inference)."""
    nb = len(dilations) + 2
    assert out_ch % nb == 0
    bc = out_ch // nb
    ks = jax.random.split(key, 4 * nb + 4)
    ki = iter(range(len(ks)))
    zeros = jnp.zeros((bc,), jnp.float32)
    ones = jnp.ones((bc,), jnp.float32)

    # --- per-branch 1x1 conv (+ BN1) folded into one (Cin, Cout) matrix ---
    w1_cols, b1_cols = [], []
    for _ in range(nb):
        w = jax.random.normal(ks[next(ki)], (bc, in_ch), jnp.float32) * np.sqrt(2.0 / bc)
        bias = zeros  # weights_init sets conv bias to 0
        gamma = 1.0 + 0.02 * jax.random.normal(ks[next(ki)], (bc,), jnp.float32)
        scale, shift = _fold_bn(gamma, zeros, zeros, ones)
        w1_cols.append(w.T * scale[None, :])          # (in_ch, bc), BN folded
        b1_cols.append(bias * scale + shift)          # (bc,)
    W1f = jnp.concatenate(w1_cols, axis=1)            # (in_ch, out_ch)
    b1f = jnp.concatenate(b1_cols)[None, :]           # (1, out_ch)

    # --- temporal-conv branches: (k,1) dilated conv weight + bias + BN2 folded ---
    wt_list, tsh_list = [], []
    for _ in dilations:
        wt = jax.random.normal(ks[next(ki)], (K, bc, bc), jnp.float32) * np.sqrt(2.0 / (bc * K))
        tbias = zeros                                  # TemporalConv.bias param (init 0)
        gamma = 1.0 + 0.02 * jax.random.normal(ks[next(ki)], (bc,), jnp.float32)
        scale, shift = _fold_bn(gamma, zeros, zeros, ones)
        wt_list.append(wt * scale[None, None, :])      # fold BN2 scale into taps
        tsh_list.append(tbias * scale + shift)
    Wt_all = jnp.stack(wt_list, axis=0)                # (n_dil, K, bc, bc)
    tshift = jnp.stack(tsh_list, axis=0)               # (n_dil, bc)

    # --- maxpool branch: second BN ---
    gamma = 1.0 + 0.02 * jax.random.normal(ks[next(ki)], (bc,), jnp.float32)
    scale, shift = _fold_bn(gamma, zeros, zeros, ones)
    bn3 = jnp.stack([scale, shift], axis=0)            # (2, bc)

    return dict(W1f=W1f, b1f=b1f, Wt_all=Wt_all, tshift=tshift, bn3=bn3)


def _prepare_kernel_params(params, K, dilations, V):
    """Re-pack module params into the kernel's channels-on-sublane layout and fold all
    (tap, dilation) temporal-conv weights into a single block-diagonal matrix."""
    W1f, b1f = params["W1f"], params["b1f"]
    Wt_all, tshift, bn3 = params["Wt_all"], params["tshift"], params["bn3"]
    Cin, Cout = W1f.shape
    n_tc = len(dilations)
    bc = Wt_all.shape[-1]

    w1t = W1f.T                                    # (Cout, Cin): h = w1t @ x
    b1c = b1f.reshape(Cout, 1)                     # per-channel column bias

    # Lane shifts (in flattened T*V units) used by each (branch, tap).
    offs = []
    for d in dilations:
        pad = (K + (K - 1) * (d - 1) - 1) // 2
        offs.append([(j * d - pad) * V for j in range(K)])
    shifts = sorted({s for o in offs for s in o})

    # Block-diagonal weight so the whole dilated-conv stage is ONE matmul:
    #   out_tc = W_tc @ vconcat_over_shifts( masked_shift(h_tc, s) )
    cols = []
    for s in shifts:
        blk = jnp.zeros((n_tc * bc, n_tc * bc), jnp.float32)
        for b in range(n_tc):
            if s in offs[b]:
                j = offs[b].index(s)
                blk = blk.at[b * bc:(b + 1) * bc, b * bc:(b + 1) * bc].set(Wt_all[b, j].T)
        cols.append(blk)
    W_tc = jnp.concatenate(cols, axis=1)           # (n_tc*bc, n_shifts*n_tc*bc)

    tsh_c = tshift.reshape(n_tc * bc, 1)           # folded TC-bias + BN2 shift
    bn3c = bn3.T                                   # (bc, 2): [:,0]=scale, [:,1]=shift
    return shifts, dict(w1t=w1t, b1c=b1c, W_tc=W_tc, tsh_c=tsh_c, bn3c=bn3c)


def _pick_block_n(N, Cin, Cout, M, max_unroll=8, vmem_budget=4 << 20):
    """Largest divisor of N whose double-buffered in+out block fits a modest VMEM
    budget and keeps the static unroll small."""
    per_sample = (Cin + Cout) * M * 4 * 2          # f32, double-buffered in + out
    cap = max(1, min(max_unroll, vmem_budget // max(per_sample, 1)))
    nb = 1
    for d in range(1, min(N, cap) + 1):
        if N % d == 0:
            nb = d
    return nb


def rht_mtc_forward(x_nchw, params, K=KSIZE, dilations=DILATIONS, stride=1):
    assert stride == 1, "kernel implements the stride=1 configuration"
    N, C, T, V = x_nchw.shape
    Cin, Cout = params["W1f"].shape
    assert C == Cin and Cin == Cout               # -> residual is identity
    n_tc = len(dilations)
    nb = n_tc + 2
    bc = Cout // nb
    M = T * V

    shifts, kp = _prepare_kernel_params(params, K, dilations, V)
    assert all(abs(s) < M for s in shifts)

    NB = _pick_block_n(N, Cin, Cout, M)            # samples per grid step

    def kernel(x_ref, w1t_ref, b1_ref, wtc_ref, tsh_ref, bn3_ref, o_ref):
        w1t = w1t_ref[...]
        b1 = b1_ref[...]
        wtc = wtc_ref[...]
        tsh = tsh_ref[...]
        bn3_scale = bn3_ref[:, 0:1]
        bn3_shift = bn3_ref[:, 1:2]

        # Boundary masks hoisted out of the per-sample loop (lane-index compares).
        lane_tc = jax.lax.broadcasted_iota(jnp.int32, (n_tc * bc, M), 1)
        tc_valid = {s: (lane_tc < M - s) if s > 0 else (lane_tc >= -s)
                    for s in shifts if s != 0}
        lane_mp = jax.lax.broadcasted_iota(jnp.int32, (bc, M), 1)
        mp_prev_ok = lane_mp >= V
        mp_next_ok = lane_mp < M - V

        for n in range(NB):                        # static unroll over the sample band
            x = x_ref[n]                                                  # (Cin, M)

            # All four branch 1x1 convs (+ folded BN1): one lane-dense MXU matmul.
            h = jnp.dot(w1t, x, preferred_element_type=jnp.float32) + b1
            h_relu = jnp.maximum(h, 0.0)
            h_tc = h_relu[:n_tc * bc, :]                  # temporal-conv branches
            h_mp = h_relu[n_tc * bc:(n_tc + 1) * bc, :]   # maxpool branch
            h_plain = h[(n_tc + 1) * bc:, :]              # last branch: no ReLU

            # Dilated (K,1) temporal convs: every tap is a lane rotation by a multiple
            # of V with a zero boundary mask (no padded-copy buffers); all taps of all
            # dilation branches collapse into a single block-diagonal matmul.
            pieces = []
            for s in shifts:
                if s == 0:
                    pieces.append(h_tc)
                    continue
                rolled = pltpu.roll(h_tc, (-s) % M, axis=1)  # rolled[:, m] == h_tc[:, m+s]
                pieces.append(jnp.where(tc_valid[s], rolled, 0.0))
            stacked = jnp.concatenate(pieces, axis=0)        # (n_shifts*n_tc*bc, M)
            out_tc = jnp.dot(wtc, stacked,
                             preferred_element_type=jnp.float32) + tsh

            # MaxPool2d((3,1), stride 1, padding (1,0)) + second BN.
            prev_t = jnp.where(mp_prev_ok,
                               pltpu.roll(h_mp, V, axis=1), -jnp.inf)     # h_mp[:, m-V]
            next_t = jnp.where(mp_next_ok,
                               pltpu.roll(h_mp, M - V, axis=1), -jnp.inf)  # h_mp[:, m+V]
            mp = jnp.maximum(jnp.maximum(prev_t, h_mp), next_t)
            out_mp = mp * bn3_scale + bn3_shift

            # Identity residual + ONE aligned, full-lane-width store per sample.
            out = jnp.concatenate([out_tc, out_mp, h_plain], axis=0) + x  # (Cout, M)
            o_ref[n] = out

    # Metadata-only reshape (row-major collapse of trailing dims): no HBM transpose.
    x_flat = x_nchw.reshape(N, Cin, M).astype(jnp.float32)
    # TODO(synk): for very large T*V (v7x: 64 MiB VMEM) tile M with a pad*V-lane halo.
    out_flat = pl.pallas_call(
        kernel,
        out_shape=jax.ShapeDtypeStruct((N, Cout, M), jnp.float32),
        grid=(N // NB,),
        in_specs=[
            pl.BlockSpec((NB, Cin, M), lambda n: (n, 0, 0)),
            # Weight blocks: constant index_map -> DMA'd once, VMEM-resident.
            pl.BlockSpec(kp["w1t"].shape, lambda n: (0, 0)),
            pl.BlockSpec(kp["b1c"].shape, lambda n: (0, 0)),
            pl.BlockSpec(kp["W_tc"].shape, lambda n: (0, 0)),
            pl.BlockSpec(kp["tsh_c"].shape, lambda n: (0, 0)),
            pl.BlockSpec(kp["bn3c"].shape, lambda n: (0, 0)),
        ],
        out_specs=pl.BlockSpec((NB, Cout, M), lambda n: (n, 0, 0)),
        compiler_params=pltpu.CompilerParams(dimension_semantics=("parallel",)),
    )(x_flat, kp["w1t"], kp["b1c"], kp["W_tc"], kp["tsh_c"], kp["bn3c"])

    return out_flat.reshape(N, Cout, T, V)        # metadata-only reshape back to NCHW


def rht_mtc_reference(x_nchw, params, K=KSIZE, dilations=DILATIONS):
    """Plain-JAX reference with the same folded parameters."""
    N, C, T, V = x_nchw.shape
    W1f, b1f = params["W1f"], params["b1f"]
    Wt_all, tshift, bn3 = params["Wt_all"], params["tshift"], params["bn3"]
    Cin, Cout = W1f.shape
    nb = len(dilations) + 2
    bc = Cout // nb
    x = jnp.transpose(x_nchw, (0, 2, 3, 1)).astype(jnp.float32)      # (N,T,V,C)
    h = jnp.einsum("ntvc,cd->ntvd", x, W1f) + b1f[0]
    mask = jnp.arange(Cout) < (nb - 1) * bc
    h = jnp.where(mask, jnp.maximum(h, 0.0), h)
    outs = []
    for b, d in enumerate(dilations):
        pad = (K + (K - 1) * (d - 1) - 1) // 2
        hb = h[..., b * bc:(b + 1) * bc]
        hp = jnp.pad(hb, ((0, 0), (pad, pad), (0, 0), (0, 0)))
        acc = jnp.zeros_like(hb)
        for j in range(K):
            acc = acc + jnp.einsum("ntvc,cd->ntvd", hp[:, j * d:j * d + T], Wt_all[b, j])
        outs.append(acc + tshift[b])
    h2 = h[..., (nb - 2) * bc:(nb - 1) * bc]
    hp2 = jnp.pad(h2, ((0, 0), (1, 1), (0, 0), (0, 0)), constant_values=-jnp.inf)
    m = jnp.maximum(jnp.maximum(hp2[:, 0:T], hp2[:, 1:T + 1]), hp2[:, 2:T + 2])
    outs.append(m * bn3[0] + bn3[1])
    outs.append(h[..., (nb - 1) * bc:])
    out = jnp.concatenate(outs, axis=-1) + x
    return out.transpose(0, 3, 1, 2)


if __name__ == "__main__":
    key = jax.random.PRNGKey(0)
    kx, kp = jax.random.split(key)

    # small shapes: N=2, C=16, T=16, V=8, out_channels=16 (4 branches of 4 channels)
    # -> per-sample tile is (16, 128): 128 lanes fully used; NB=2 -> single grid step.
    N, C, T, V = 2, 16, 16, 8
    out_channels = 16

    x = jax.random.normal(kx, (N, C, T, V), jnp.float32)   # NCHW like the PyTorch module
    params = make_params(kp, C, out_channels)

    out = rht_mtc_forward(x, params)
    out = jax.block_until_ready(out)
    assert out.shape == (N, out_channels, T, V)

    ref = rht_mtc_reference(x, params)
    np.testing.assert_allclose(np.asarray(out), np.asarray(ref), rtol=2e-2, atol=2e-2)

    print("KERNEL_OK")
</pallas_src>

<mosaic_0001>
module attributes {stable_mosaic.version = 11 : i64} {
  func.func @kernel(%arg0: i32, %arg1: memref<2x16x128xf32, #tpu.memory_space<vmem>>, %arg2: memref<16x16xf32, #tpu.memory_space<vmem>>, %arg3: memref<16x1xf32, #tpu.memory_space<vmem>>, %arg4: memref<8x56xf32, #tpu.memory_space<vmem>>, %arg5: memref<8x1xf32, #tpu.memory_space<vmem>>, %arg6: memref<4x2xf32, #tpu.memory_space<vmem>>, %arg7: memref<2x16x128xf32, #tpu.memory_space<vmem>>) attributes {dimension_semantics = [#tpu.dimension_semantics<parallel>], iteration_bounds = array<i64: 1>, scalar_prefetch = 0 : i64, scratch_operands = 0 : i64, tpu.core_type = #tpu.core_type<tc>, window_params = [{transform_indices = @transform_0, window_bounds = array<i64: 2, 16, 128>}, {pipeline_mode = #tpu.pipeline_mode<synchronous>, transform_indices = @transform_1, window_bounds = array<i64: 16, 16>}, {pipeline_mode = #tpu.pipeline_mode<synchronous>, transform_indices = @transform_2, window_bounds = array<i64: 16, 1>}, {pipeline_mode = #tpu.pipeline_mode<synchronous>, transform_indices = @transform_3, window_bounds = array<i64: 8, 56>}, {pipeline_mode = #tpu.pipeline_mode<synchronous>, transform_indices = @transform_4, window_bounds = array<i64: 8, 1>}, {pipeline_mode = #tpu.pipeline_mode<synchronous>, transform_indices = @transform_5, window_bounds = array<i64: 4, 2>}, {transform_indices = @transform_6, window_bounds = array<i64: 2, 16, 128>}]} {
    %c0 = arith.constant 0 : index
    %c0_0 = arith.constant 0 : index
    %0 = vector.load %arg2[%c0, %c0_0] : memref<16x16xf32, #tpu.memory_space<vmem>>, vector<16x16xf32>
    %c0_1 = arith.constant 0 : index
    %c0_2 = arith.constant 0 : index
    %1 = vector.load %arg3[%c0_1, %c0_2] : memref<16x1xf32, #tpu.memory_space<vmem>>, vector<16x1xf32>
    %c0_3 = arith.constant 0 : index
    %c0_4 = arith.constant 0 : index
    %2 = vector.load %arg4[%c0_3, %c0_4] : memref<8x56xf32, #tpu.memory_space<vmem>>, vector<8x56xf32>
    %c0_5 = arith.constant 0 : index
    %c0_6 = arith.constant 0 : index
    %3 = vector.load %arg5[%c0_5, %c0_6] : memref<8x1xf32, #tpu.memory_space<vmem>>, vector<8x1xf32>
    %c0_7 = arith.constant 0 : index
    %c0_8 = arith.constant 0 : index
    %4 = vector.load %arg6[%c0_7, %c0_8] : memref<4x2xf32, #tpu.memory_space<vmem>>, vector<4x1xf32>
    %c0_9 = arith.constant 0 : index
    %c1 = arith.constant 1 : index
    %5 = vector.load %arg6[%c0_9, %c1] : memref<4x2xf32, #tpu.memory_space<vmem>>, vector<4x1xf32>
    %6 = tpu.iota {dimensions = array<i32: 1>} : vector<8x128xi32>
    %c32_i32 = arith.constant 32 : i32
    %7 = vector.broadcast %c32_i32 : i32 to vector<8x128xi32>
    %8 = arith.cmpi sge, %6, %7 : vector<8x128xi32>
    %c16_i32 = arith.constant 16 : i32
    %9 = vector.broadcast %c16_i32 : i32 to vector<8x128xi32>
    %10 = arith.cmpi sge, %6, %9 : vector<8x128xi32>
    %c8_i32 = arith.constant 8 : i32
    %11 = vector.broadcast %c8_i32 : i32 to vector<8x128xi32>
    %12 = arith.cmpi sge, %6, %11 : vector<8x128xi32>
    %c120_i32 = arith.constant 120 : i32
    %13 = vector.broadcast %c120_i32 : i32 to vector<8x128xi32>
    %14 = arith.cmpi slt, %6, %13 : vector<8x128xi32>
    %c112_i32 = arith.constant 112 : i32
    %15 = vector.broadcast %c112_i32 : i32 to vector<8x128xi32>
    %16 = arith.cmpi slt, %6, %15 : vector<8x128xi32>
    %c96_i32 = arith.constant 96 : i32
    %17 = vector.broadcast %c96_i32 : i32 to vector<8x128xi32>
    %18 = arith.cmpi slt, %6, %17 : vector<8x128xi32>
    %19 = tpu.iota {dimensions = array<i32: 1>} : vector<4x128xi32>
    %c8_i32_10 = arith.constant 8 : i32
    %20 = vector.broadcast %c8_i32_10 : i32 to vector<4x128xi32>
    %21 = arith.cmpi sge, %19, %20 : vector<4x128xi32>
    %c120_i32_11 = arith.constant 120 : i32
    %22 = vector.broadcast %c120_i32_11 : i32 to vector<4x128xi32>
    %23 = arith.cmpi slt, %19, %22 : vector<4x128xi32>
    %c0_12 = arith.constant 0 : index
    %c0_13 = arith.constant 0 : index
    %c0_14 = arith.constant 0 : index
    %24 = vector.load %arg1[%c0_12, %c0_13, %c0_14] : memref<2x16x128xf32, #tpu.memory_space<vmem>>, vector<1x16x128xf32>
    %25 = vector.shape_cast %24 : vector<1x16x128xf32> to vector<16x128xf32>
    %cst = arith.constant dense<0.000000e+00> : vector<16x128xf32>
    %26 = tpu.matmul %0, %25, %cst {dimension_numbers = #tpu.dot_dimension_numbers<[1], [0], [0], [1], [0, 0, 1, 1], [], []>} : vector<16x16xf32>, vector<16x128xf32>, vector<16x128xf32> -> vector<16x128xf32>
    %27 = vector.broadcast %1 : vector<16x1xf32> to vector<16x128xf32>
    %28 = arith.addf %26, %27 : vector<16x128xf32>
    %cst_15 = arith.constant 0.000000e+00 : f32
    %29 = vector.broadcast %cst_15 : f32 to vector<16x128xf32>
    %30 = arith.maximumf %28, %29 : vector<16x128xf32>
    %31 = vector.extract_strided_slice %30 {offsets = [0, 0], sizes = [8, 128], strides = [1, 1]} : vector<16x128xf32> to vector<8x128xf32>
    %32 = vector.extract_strided_slice %30 {offsets = [8, 0], sizes = [4, 128], strides = [1, 1]} : vector<16x128xf32> to vector<4x128xf32>
    %33 = vector.extract_strided_slice %28 {offsets = [12, 0], sizes = [4, 128], strides = [1, 1]} : vector<16x128xf32> to vector<4x128xf32>
    %c32_i32_16 = arith.constant 32 : i32
    %34 = tpu.dynamic_rotate %31 by %c32_i32_16 dim 1 : vector<8x128xf32>, i32 -> vector<8x128xf32>
    %cst_17 = arith.constant 0.000000e+00 : f32
    %35 = vector.broadcast %cst_17 : f32 to vector<8x128xf32>
    %36 = arith.select %8, %34, %35 : vector<8x128xi1>, vector<8x128xf32>
    %c16_i32_18 = arith.constant 16 : i32
    %37 = tpu.dynamic_rotate %31 by %c16_i32_18 dim 1 : vector<8x128xf32>, i32 -> vector<8x128xf32>
    %cst_19 = arith.constant 0.000000e+00 : f32
    %38 = vector.broadcast %cst_19 : f32 to vector<8x128xf32>
    %39 = arith.select %10, %37, %38 : vector<8x128xi1>, vector<8x128xf32>
    %c8_i32_20 = arith.constant 8 : i32
    %40 = tpu.dynamic_rotate %31 by %c8_i32_20 dim 1 : vector<8x128xf32>, i32 -> vector<8x128xf32>
    %cst_21 = arith.constant 0.000000e+00 : f32
    %41 = vector.broadcast %cst_21 : f32 to vector<8x128xf32>
    %42 = arith.select %12, %40, %41 : vector<8x128xi1>, vector<8x128xf32>
    %c120_i32_22 = arith.constant 120 : i32
    %43 = tpu.dynamic_rotate %31 by %c120_i32_22 dim 1 : vector<8x128xf32>, i32 -> vector<8x128xf32>
    %cst_23 = arith.constant 0.000000e+00 : f32
    %44 = vector.broadcast %cst_23 : f32 to vector<8x128xf32>
    %45 = arith.select %14, %43, %44 : vector<8x128xi1>, vector<8x128xf32>
    %c112_i32_24 = arith.constant 112 : i32
    %46 = tpu.dynamic_rotate %31 by %c112_i32_24 dim 1 : vector<8x128xf32>, i32 -> vector<8x128xf32>
    %cst_25 = arith.constant 0.000000e+00 : f32
    %47 = vector.broadcast %cst_25 : f32 to vector<8x128xf32>
    %48 = arith.select %16, %46, %47 : vector<8x128xi1>, vector<8x128xf32>
    %c96_i32_26 = arith.constant 96 : i32
    %49 = tpu.dynamic_rotate %31 by %c96_i32_26 dim 1 : vector<8x128xf32>, i32 -> vector<8x128xf32>
    %cst_27 = arith.constant 0.000000e+00 : f32
    %50 = vector.broadcast %cst_27 : f32 to vector<8x128xf32>
    %51 = arith.select %18, %49, %50 : vector<8x128xi1>, vector<8x128xf32>
    %52 = tpu.concatenate %36, %39, %42, %31, %45, %48, %51 in 0 : vector<8x128xf32>, vector<8x128xf32>, vector<8x128xf32>, vector<8x128xf32>, vector<8x128xf32>, vector<8x128xf32>, vector<8x128xf32> -> vector<56x128xf32>
    %cst_28 = arith.constant dense<0.000000e+00> : vector<8x128xf32>
    %53 = tpu.matmul %2, %52, %cst_28 {dimension_numbers = #tpu.dot_dimension_numbers<[1], [0], [0], [1], [0, 0, 1, 1], [], []>} : vector<8x56xf32>, vector<56x128xf32>, vector<8x128xf32> -> vector<8x128xf32>
    %54 = vector.broadcast %3 : vector<8x1xf32> to vector<8x128xf32>
    %55 = arith.addf %53, %54 : vector<8x128xf32>
    %c8_i32_29 = arith.constant 8 : i32
    %56 = tpu.dynamic_rotate %32 by %c8_i32_29 dim 1 : vector<4x128xf32>, i32 -> vector<4x128xf32>
    %cst_30 = arith.constant 0xFF800000 : f32
    %57 = vector.broadcast %cst_30 : f32 to vector<4x128xf32>
    %58 = arith.select %21, %56, %57 : vector<4x128xi1>, vector<4x128xf32>
    %c120_i32_31 = arith.constant 120 : i32
    %59 = tpu.dynamic_rotate %32 by %c120_i32_31 dim 1 : vector<4x128xf32>, i32 -> vector<4x128xf32>
    %cst_32 = arith.constant 0xFF800000 : f32
    %60 = vector.broadcast %cst_32 : f32 to vector<4x128xf32>
    %61 = arith.select %23, %59, %60 : vector<4x128xi1>, vector<4x128xf32>
    %62 = arith.maximumf %58, %32 : vector<4x128xf32>
    %63 = arith.maximumf %62, %61 : vector<4x128xf32>
    %64 = vector.broadcast %4 : vector<4x1xf32> to vector<4x128xf32>
    %65 = arith.mulf %63, %64 : vector<4x128xf32>
    %66 = vector.broadcast %5 : vector<4x1xf32> to vector<4x128xf32>
    %67 = arith.addf %65, %66 : vector<4x128xf32>
    %68 = tpu.concatenate %55, %67, %33 in 0 : vector<8x128xf32>, vector<4x128xf32>, vector<4x128xf32> -> vector<16x128xf32>
    %69 = arith.addf %68, %25 : vector<16x128xf32>
    %c0_33 = arith.constant 0 : index
    %c0_34 = arith.constant 0 : index
    %c0_35 = arith.constant 0 : index
    %70 = vector.load %arg7[%c0_33, %c0_34, %c0_35] : memref<2x16x128xf32, #tpu.memory_space<vmem>>, vector<1x16x128xf32>
    %71 = vector.shape_cast %70 : vector<1x16x128xf32> to vector<16x128xf32>
    %72 = vector.shape_cast %69 : vector<16x128xf32> to vector<1x16x128xf32>
    tpu.vector_store %arg7[%c0_33, %c0_34, %c0_35], %72 {strides = array<i32>} : memref<2x16x128xf32, #tpu.memory_space<vmem>>, vector<1x16x128xf32>,
    %c1_36 = arith.constant 1 : index
    %c0_37 = arith.constant 0 : index
    %c0_38 = arith.constant 0 : index
    %73 = vector.load %arg1[%c1_36, %c0_37, %c0_38] : memref<2x16x128xf32, #tpu.memory_space<vmem>>, vector<1x16x128xf32>
    %74 = vector.shape_cast %73 : vector<1x16x128xf32> to vector<16x128xf32>
    %cst_39 = arith.constant dense<0.000000e+00> : vector<16x128xf32>
    %75 = tpu.matmul %0, %74, %cst_39 {dimension_numbers = #tpu.dot_dimension_numbers<[1], [0], [0], [1], [0, 0, 1, 1], [], []>} : vector<16x16xf32>, vector<16x128xf32>, vector<16x128xf32> -> vector<16x128xf32>
    %76 = vector.broadcast %1 : vector<16x1xf32> to vector<16x128xf32>
    %77 = arith.addf %75, %76 : vector<16x128xf32>
    %cst_40 = arith.constant 0.000000e+00 : f32
    %78 = vector.broadcast %cst_40 : f32 to vector<16x128xf32>
    %79 = arith.maximumf %77, %78 : vector<16x128xf32>
    %80 = vector.extract_strided_slice %79 {offsets = [0, 0], sizes = [8, 128], strides = [1, 1]} : vector<16x128xf32> to vector<8x128xf32>
    %81 = vector.extract_strided_slice %79 {offsets = [8, 0], sizes = [4, 128], strides = [1, 1]} : vector<16x128xf32> to vector<4x128xf32>
    %82 = vector.extract_strided_slice %77 {offsets = [12, 0], sizes = [4, 128], strides = [1, 1]} : vector<16x128xf32> to vector<4x128xf32>
    %c32_i32_41 = arith.constant 32 : i32
    %83 = tpu.dynamic_rotate %80 by %c32_i32_41 dim 1 : vector<8x128xf32>, i32 -> vector<8x128xf32>
    %cst_42 = arith.constant 0.000000e+00 : f32
    %84 = vector.broadcast %cst_42 : f32 to vector<8x128xf32>
    %85 = arith.select %8, %83, %84 : vector<8x128xi1>, vector<8x128xf32>
    %c16_i32_43 = arith.constant 16 : i32
    %86 = tpu.dynamic_rotate %80 by %c16_i32_43 dim 1 : vector<8x128xf32>, i32 -> vector<8x128xf32>
    %cst_44 = arith.constant 0.000000e+00 : f32
    %87 = vector.broadcast %cst_44 : f32 to vector<8x128xf32>
    %88 = arith.select %10, %86, %87 : vector<8x128xi1>, vector<8x128xf32>
    %c8_i32_45 = arith.constant 8 : i32
    %89 = tpu.dynamic_rotate %80 by %c8_i32_45 dim 1 : vector<8x128xf32>, i32 -> vector<8x128xf32>
    %cst_46 = arith.constant 0.000000e+00 : f32
    %90 = vector.broadcast %cst_46 : f32 to vector<8x128xf32>
    %91 = arith.select %12, %89, %90 : vector<8x128xi1>, vector<8x128xf32>
    %c120_i32_47 = arith.constant 120 : i32
    %92 = tpu.dynamic_rotate %80 by %c120_i32_47 dim 1 : vector<8x128xf32>, i32 -> vector<8x128xf32>
    %cst_48 = arith.constant 0.000000e+00 : f32
    %93 = vector.broadcast %cst_48 : f32 to vector<8x128xf32>
    %94 = arith.select %14, %92, %93 : vector<8x128xi1>, vector<8x128xf32>
    %c112_i32_49 = arith.constant 112 : i32
    %95 = tpu.dynamic_rotate %80 by %c112_i32_49 dim 1 : vector<8x128xf32>, i32 -> vector<8x128xf32>
    %cst_50 = arith.constant 0.000000e+00 : f32
    %96 = vector.broadcast %cst_50 : f32 to vector<8x128xf32>
    %97 = arith.select %16, %95, %96 : vector<8x128xi1>, vector<8x128xf32>
    %c96_i32_51 = arith.constant 96 : i32
    %98 = tpu.dynamic_rotate %80 by %c96_i32_51 dim 1 : vector<8x128xf32>, i32 -> vector<8x128xf32>
    %cst_52 = arith.constant 0.000000e+00 : f32
    %99 = vector.broadcast %cst_52 : f32 to vector<8x128xf32>
    %100 = arith.select %18, %98, %99 : vector<8x128xi1>, vector<8x128xf32>
    %101 = tpu.concatenate %85, %88, %91, %80, %94, %97, %100 in 0 : vector<8x128xf32>, vector<8x128xf32>, vector<8x128xf32>, vector<8x128xf32>, vector<8x128xf32>, vector<8x128xf32>, vector<8x128xf32> -> vector<56x128xf32>
    %cst_53 = arith.constant dense<0.000000e+00> : vector<8x128xf32>
    %102 = tpu.matmul %2, %101, %cst_53 {dimension_numbers = #tpu.dot_dimension_numbers<[1], [0], [0], [1], [0, 0, 1, 1], [], []>} : vector<8x56xf32>, vector<56x128xf32>, vector<8x128xf32> -> vector<8x128xf32>
    %103 = vector.broadcast %3 : vector<8x1xf32> to vector<8x128xf32>
    %104 = arith.addf %102, %103 : vector<8x128xf32>
    %c8_i32_54 = arith.constant 8 : i32
    %105 = tpu.dynamic_rotate %81 by %c8_i32_54 dim 1 : vector<4x128xf32>, i32 -> vector<4x128xf32>
    %cst_55 = arith.constant 0xFF800000 : f32
    %106 = vector.broadcast %cst_55 : f32 to vector<4x128xf32>
    %107 = arith.select %21, %105, %106 : vector<4x128xi1>, vector<4x128xf32>
    %c120_i32_56 = arith.constant 120 : i32
    %108 = tpu.dynamic_rotate %81 by %c120_i32_56 dim 1 : vector<4x128xf32>, i32 -> vector<4x128xf32>
    %cst_57 = arith.constant 0xFF800000 : f32
    %109 = vector.broadcast %cst_57 : f32 to vector<4x128xf32>
    %110 = arith.select %23, %108, %109 : vector<4x128xi1>, vector<4x128xf32>
    %111 = arith.maximumf %107, %81 : vector<4x128xf32>
    %112 = arith.maximumf %111, %110 : vector<4x128xf32>
    %113 = vector.broadcast %4 : vector<4x1xf32> to vector<4x128xf32>
    %114 = arith.mulf %112, %113 : vector<4x128xf32>
    %115 = vector.broadcast %5 : vector<4x1xf32> to vector<4x128xf32>
    %116 = arith.addf %114, %115 : vector<4x128xf32>
    %117 = tpu.concatenate %104, %116, %82 in 0 : vector<8x128xf32>, vector<4x128xf32>, vector<4x128xf32> -> vector<16x128xf32>
    %118 = arith.addf %117, %74 : vector<16x128xf32>
    %c1_58 = arith.constant 1 : index
    %c0_59 = arith.constant 0 : index
    %c0_60 = arith.constant 0 : index
    %119 = vector.load %arg7[%c1_58, %c0_59, %c0_60] : memref<2x16x128xf32, #tpu.memory_space<vmem>>, vector<1x16x128xf32>
    %120 = vector.shape_cast %119 : vector<1x16x128xf32> to vector<16x128xf32>
    %121 = vector.shape_cast %118 : vector<16x128xf32> to vector<1x16x128xf32>
    tpu.vector_store %arg7[%c1_58, %c0_59, %c0_60], %121 {strides = array<i32>} : memref<2x16x128xf32, #tpu.memory_space<vmem>>, vector<1x16x128xf32>,
    return
  }
  func.func @transform_0(%arg0: i32) -> (i32, i32, i32) {
    %c0_i32 = arith.constant 0 : i32
    %c0_i32_0 = arith.constant 0 : i32
    %c0_i32_1 = arith.constant 0 : i32
    return %arg0, %c0_i32, %c0_i32_0 : i32, i32, i32
  }
  func.func @transform_1(%arg0: i32) -> (i32, i32) {
    %c0_i32 = arith.constant 0 : i32
    %c0_i32_0 = arith.constant 0 : i32
    %c0_i32_1 = arith.constant 0 : i32
    return %c0_i32, %c0_i32_0 : i32, i32
  }
  func.func @transform_2(%arg0: i32) -> (i32, i32) {
    %c0_i32 = arith.constant 0 : i32
    %c0_i32_0 = arith.constant 0 : i32
    %c0_i32_1 = arith.constant 0 : i32
    return %c0_i32, %c0_i32_0 : i32, i32
  }
  func.func @transform_3(%arg0: i32) -> (i32, i32) {
    %c0_i32 = arith.constant 0 : i32
    %c0_i32_0 = arith.constant 0 : i32
    %c0_i32_1 = arith.constant 0 : i32
    return %c0_i32, %c0_i32_0 : i32, i32
  }
  func.func @transform_4(%arg0: i32) -> (i32, i32) {
    %c0_i32 = arith.constant 0 : i32
    %c0_i32_0 = arith.constant 0 : i32
    %c0_i32_1 = arith.constant 0 : i32
    return %c0_i32, %c0_i32_0 : i32, i32
  }
  func.func @transform_5(%arg0: i32) -> (i32, i32) {
    %c0_i32 = arith.constant 0 : i32
    %c0_i32_0 = arith.constant 0 : i32
    %c0_i32_1 = arith.constant 0 : i32
    return %c0_i32, %c0_i32_0 : i32, i32
  }
  func.func @transform_6(%arg0: i32) -> (i32, i32, i32) {
    %c0_i32 = arith.constant 0 : i32
    %c0_i32_0 = arith.constant 0 : i32
    %c0_i32_1 = arith.constant 0 : i32
    return %arg0, %c0_i32, %c0_i32_0 : i32, i32, i32
  }
}

</mosaic_0001>

<bundles_post_ra>
// kernel: tpu_custom_call.1
= control target key start
LH: loop header
LB: loop body
LE: loop exit
PB: predicated region body
PF: predicated region fallthrough
CT: control target
= control target key end

     0   :  { %11 = vsyncpa [#allocation3], 0  ;;  %s846_s0 = inlined_call_operand.hbm [shape: f32[2,16,128], index: 0, kind: input, shape index: {}]   ;;  %s847_s1 = inlined_call_operand.vmem [shape: f32[16,16], index: 1, kind: input, shape index: {}]   ;;  %s848_s2 = inlined_call_operand.vmem [shape: f32[16,1], index: 2, kind: input, shape index: {}]   ;;  %s849_s3 = inlined_call_operand.vmem [shape: f32[8,56], index: 3, kind: input, shape index: {}]   ;;  %s850_s4 = inlined_call_operand.vmem [shape: f32[8,1], index: 4, kind: input, shape index: {}]   ;;  %s851_s5 = inlined_call_operand.vmem [shape: f32[4,2], index: 5, kind: input, shape index: {}]   ;;  %s852_s6 = inlined_call_operand.hbm [shape: f32[2,16,128], index: 6, kind: output, shape index: {}]  }
   0x1   :  { %12 = vsyncpa [#allocation4], 0  ;;  %s687_s21 = smov [#allocation2]   ;;  %s639_s25 = scalar_lea.hbm %s846_s0, 512 }
   0x2   :  { %s18_s22 = sshll.u32 %s687_s21, 4  ;;  %p640_p0 = scmp.ne.s32.totalorder %s846_s0, %s639_s25  ;;  %s19_s22 = int_to_ptr.vmem [resolvable:$true] %s18_s22 }
   0x3   :  { %p643_p1 = scmp.lt.u32.totalorder %s639_s25, %s846_s0 }
   0x5   :  { %p645_p2 = pnand %p643_p1, %p640_p0 }
   0x7   :  { %648 = shalt.err (!%p645_p2)
}
   0x8   :  { %s649_s30 = scalar_lea.vmem %s19_s22, 512  ;;  %p654_p4 = scmp.lt.s32.totalorder %s19_s22, %s19_s22 }
   0x9   :  { %p650_p3 = scmp.ne.s32.totalorder %s19_s22, %s649_s30  ;;  %p655_p5 = scmp.lt.s32.totalorder %s649_s30, %s649_s30 }
   0xb   :  { %p656_p6 = por %p655_p5, %p654_p4 }
   0xd   :  { %p657_p7 = pnand %p656_p6, %p650_p3 }
   0xf   :  { %660 = shalt.err (!%p657_p7)
}
  0x10   :  { %s688_s7 = smov 128   ;;  %s689_s8 = smov 8  }
  0x11   :  { %24 = dma.hbm_to_vmem [thread:$0]  %s846_s0, 512, %s19_s22, [#allocation3], %s688_s7, %s688_s7, %s689_s8  }
  0x12   :  { %683 = dma.done.wait [#allocation3], 512  }
  0x13   :  { %684 = vsyncadd [#allocation3], 4294966784  ;;  %v690_v0 = vmov 0   ;;  %vm65_vm0 = vcmask 130048   ;;  %v752_v1 = vld [vmem:[#allocation2] sm:$0xff]  ;;  %v754_v2 = vld [vmem:[#allocation2 + $0x8] sm:$0xff]  ;;  %v45_v26 = vlaneseq }
  0x14   :  { %609 = vset.pattern.permute.xlu0 %v690_v0  ;;  %635 = vset.pattern.permute.xlu1 %v690_v0  ;;  %v756_v3 = vld [vmem:[#allocation2 + $0x10] sm:$0xff]  ;;  %v562_v4 = vpack.c.bf16 %v754_v2, %v752_v1  ;;  %v760_v5 = vld [vmem:[#allocation2 + $0x18] sm:$0xff]  ;;  %v38_v6 = vld [vmem:[%s847_s1] sm:$0xff]  ;;  %v691_v11 = vmov 0.0|0.0   ;;  %s693_s16 = smov 32   ;;  %s694_s17 = smov 120  }
  0x15   :  { %v578_v7 = vpack.c.bf16 %v760_v5, %v756_v3  ;;  %518 = vmatprep.mubr.msk.f32.mxu1 %vm65_vm0, %v38_v6  ;;  %542 = vmatprep.mubr.msk.f32.mxu0 %vm65_vm0, %v38_v6  ;;  %v40_v8 = vld [vmem:[%s848_s2] sm:$0xff]  ;;  %v39_v9 = vld [vmem:[%s847_s1 + $0x8] sm:$0xff]  ;;  %s692_s1 = smov 16   ;;  %vm695_vm1 = vmmov 0   ;;  %v696_v21 = vmov 0.0   ;;  %s697_s18 = smov 112  }
  0x16   :  { %563 = vmatprep.subr.bf16.mxu1 %v562_v4  ;;  %57 = vperm.xlu0 %609, %v40_v8   ;;  %s698_s19 = smov 96   ;;  %v41_v22 = vld [vmem:[%s848_s2 + $0x8] sm:$0xff]  ;;  %v44_v23 = vld [vmem:[%s851_s5] sm:$0xf]  ;;  %v699_v24 = vmov 1   ;;  %v794_v27 = vand.u32 127, %v45_v26 }
  0x17   :  { %579 = vmatprep.subr.bf16.mxu0 %v578_v7  ;;  %565 = vmatpush3.bf16.msra.mxu1 %v562_v4  ;;  %v43_v25 = vld [vmem:[%s850_s4] sm:$0xff]  ;;  %vm700_vm6 = vmmov 1   ;;  %vm172_vm12 = vcmask 457728   ;;  %vm265_vm13 = vcmask 1043456  }
  0x18   :  { %581 = vmatpush3.bf16.msra.mxu0 %v578_v7  ;;  %566 = vmatprep.subr.bf16.mxu1 %v691_v11  ;;  %vm47_vm2 = vcmp.ge.s32.totalorder %v794_v27, 32  ;;  %vm48_vm3 = vcmp.ge.s32.totalorder %v794_v27, 16  ;;  %vm49_vm5 = vcmp.ge.s32.totalorder %v794_v27, 8  ;;  %vm50_vm8 = vcmp.lt.s32.totalorder %v794_v27, 120  ;;  %v42_v49 = vld [vmem:[%s849_s3] sm:$0xff]  ;;  %s701_s3 = smov [#allocation5]  }
  0x19   :  { %582 = vmatprep.subr.bf16.mxu0 %v691_v11  ;;  %vm568_vm4 = vmpackc.low %vm48_vm3, %vm47_vm2  ;;  %vm51_vm9 = vcmp.lt.s32.totalorder %v794_v27, 112  ;;  %vm52_vm11 = vcmp.lt.s32.totalorder %v794_v27, 96  ;;  %s460_s5 = sshll.u32 %s701_s3, 4  ;;  %s461_s5 = int_to_ptr.vmem [resolvable:$true] %s460_s5 }
  0x1a   :  { %519 = vmatmul.mubr.msk.f32.vlgmr.msra.gmra.mrb[0].mxu1 %vm65_vm0, %v39_v9  ;;  %vm572_vm7 = vmpackc.low %vm700_vm6, %vm49_vm5  ;;  %s661_s26 = scalar_lea.vmem %s461_s5, 512  ;;  %p666_p9 = scmp.lt.s32.totalorder %s461_s5, %s461_s5 }
  0x1b   :  { %543 = vmatmul.mubr.msk.f32.vlgmr.msra.gmra.mrb[0].mxu0 %vm65_vm0, %v39_v9  ;;  %535 = vmatprep.mubr.msk.f32.mxu1 %vm695_vm1, %v696_v21  ;;  %vm576_vm10 = vmpackc.low %vm51_vm9, %vm50_vm8  ;;  %p662_p8 = scmp.ne.s32.totalorder %s461_s5, %s661_s26  ;;  %p667_p10 = scmp.lt.s32.totalorder %s661_s26, %s661_s26 }
  0x1c   :  { %559 = vmatprep.mubr.msk.f32.mxu0 %vm695_vm1, %v696_v21 }
  0x1d   :  { %p668_p11 = por %p667_p10, %p666_p9 }
  0x1f   :  { %p669_p12 = pnand %p668_p11, %p662_p8 }
  0x95   :  { %v58_v10 = vpop.permute.xlu0 %57 }
  0xed   :  { %v779_v12 = vpop.f32.mrb[0].mxu1 }
  0xee   :  { %v781_v13 = vpop.f32.mrb[0].mxu0  ;;  %v138_v14 = vpop.f32.mrb[1].mxu1 }
  0xef   :  { %v139_v15 = vadd.f32 %v138_v14, %v58_v10  ;;  %v340_v16 = vpop.f32.mrb[1].mxu0 }
  0xf0   :  { %v341_v17 = vadd.f32 %v340_v16, %v58_v10 }
  0xf1   :  { %v147_v18 = vmax.f32 %v139_v15, 0.0 }
  0xf2   :  { %v349_v19 = vmax.f32 %v341_v17, 0.0 }
  0xf4   :  { %v615_v20 = vpack.i.bf16 %v349_v19, %v147_v18 }
  0xf6   :  { %616 = vrot.lane.b32.xlu1 %v615_v20, %s692_s1  ;;  %611 = vrot.lane.b32.xlu0 %v615_v20, %s693_s16 }
  0xfa   :  { %621 = vrot.lane.b32.xlu1 %v615_v20, %s689_s8  ;;  %626 = vrot.lane.b32.xlu0 %v615_v20, %s694_s17 }
  0xfe   :  { %631 = vrot.lane.b32.xlu1 %v615_v20, %s697_s18  ;;  %164 = vrot.lane.b32.xlu0 %v147_v18, %s698_s19 }
 0x102   :  { %366 = vrot.lane.b32.xlu1 %v349_v19, %s698_s19  ;;  %62 = vperm.xlu0 %609, %v41_v22  }
 0x106   :  { %256 = vperm.xlu1 %635, %v44_v23   ;;  %638 = vset.pattern.permute.xlu0 %v699_v24 }
 0x10a   :  { %636 = vset.pattern.permute.xlu1 %v699_v24 }
 0x10b   :  { %261 = vperm.xlu1 %636, %v44_v23  }
 0x10f   :  { %637 = vset.pattern.permute.xlu1 %v690_v0 }
 0x110   :  { %169 = vperm.xlu1 %637, %v43_v25  }
 0x168   :  { %v617_v28 = vpop.permute.xlu1 %616  ;;  %v612_v29 = vpop.permute.xlu0 %611 }
 0x169   :  { %v619_v30 = vunpack.i.h.bf16 %v617_v28  ;;  %v618_v31 = vunpack.i.l.bf16 %v617_v28  ;;  %v614_v32 = vunpack.i.h.bf16 %v612_v29  ;;  %v613_v33 = vunpack.i.l.bf16 %v612_v29 }
 0x16b   :  { %v583_v34 = vpack.c.bf16 %v619_v30, %v614_v32  ;;  %v567_v35 = vpack.c.bf16 %v618_v31, %v613_v33 }
 0x16c   :  { %v622_v36 = vpop.permute.xlu1 %621  ;;  %v627_v39 = vpop.permute.xlu0 %626 }
 0x16d   :  { %v624_v37 = vunpack.i.h.bf16 %v622_v36  ;;  %v623_v38 = vunpack.i.l.bf16 %v622_v36  ;;  %569 = vmatpush3.bf16.msk.msra.mxu1 %vm568_vm4, %v567_v35  ;;  %585 = vmatpush3.bf16.msk.msra.mxu0 %vm568_vm4, %v583_v34  ;;  %v629_v43 = vunpack.i.h.bf16 %v627_v39  ;;  %v628_v44 = vunpack.i.l.bf16 %v627_v39 }
 0x16e   :  { %570 = vmatprep.subr.bf16.mxu1 %v691_v11  ;;  %586 = vmatprep.subr.bf16.mxu0 %v691_v11 }
 0x16f   :  { %v587_v40 = vpack.c.bf16 %v349_v19, %v624_v37  ;;  %v571_v41 = vpack.c.bf16 %v147_v18, %v623_v38 }
 0x170   :  { %v632_v42 = vpop.permute.xlu1 %631  ;;  %v165_v50 = vpop.permute.xlu0 %164 }
 0x171   :  { %v634_v45 = vunpack.i.h.bf16 %v632_v42  ;;  %v633_v46 = vunpack.i.l.bf16 %v632_v42  ;;  %573 = vmatpush3.bf16.msk.msra.mxu1 %vm572_vm7, %v571_v41  ;;  %589 = vmatpush3.bf16.msk.msra.mxu0 %vm572_vm7, %v587_v40 }
 0x172   :  { %574 = vmatprep.subr.bf16.mxu1 %v691_v11  ;;  %590 = vmatprep.subr.bf16.mxu0 %v691_v11 }
 0x173   :  { %v575_v47 = vpack.c.bf16 %v633_v46, %v628_v44  ;;  %v591_v48 = vpack.c.bf16 %v634_v45, %v629_v43 }
 0x174   :  { %v367_v51 = vpop.permute.xlu1 %366 }
 0x175   :  { %577 = vmatpush3.bf16.msk.msra.mxu1 %vm576_vm10, %v575_v47  ;;  %593 = vmatpush3.bf16.msk.msra.mxu0 %vm576_vm10, %v591_v48 }
 0x176   :  { %533 = vmatprep.subr.mxu1 %v696_v21  ;;  %557 = vmatprep.subr.mxu0 %v696_v21 }
 0x179   :  { %534 = vmatpush3.msk.msra.mxu1 %vm52_vm11, %v165_v50  ;;  %558 = vmatpush3.msk.msra.mxu0 %vm52_vm11, %v367_v51 }
 0x17a   :  { %536 = vmatmul.mubr.msk.f32.vlgmr.msra.gmra.mrb[2].mxu1 %vm172_vm12, %v42_v49  ;;  %560 = vmatmul.mubr.msk.f32.vlgmr.msra.gmra.mrb[2].mxu0 %vm172_vm12, %v42_v49 }
 0x181   :  { %v63_v52 = vpop.permute.xlu0 %62 }
 0x182   :  { %v144_v53 = vadd.f32 %v779_v12, %v63_v52  ;;  %v346_v54 = vadd.f32 %v781_v13, %v63_v52 }
 0x184   :  { %v148_v55 = vmax.f32 %v144_v53, 0.0  ;;  %v350_v56 = vmax.f32 %v346_v54, 0.0 }
 0x185   :  { %v257_v57 = vpop.permute.xlu1 %256 }
 0x186   :  { %442 = vrot.lane.b32.xlu1 %v350_v56, %s694_s17  ;;  %246 = vrot.lane.b32.xlu0 %v148_v55, %s689_s8 }
 0x18a   :  { %439 = vrot.lane.b32.xlu0 %v350_v56, %s689_s8  ;;  %v262_v58 = vpop.permute.xlu1 %261 }
 0x18e   :  { %249 = vrot.lane.b32.xlu0 %v148_v55, %s694_s17 }
 0x18f   :  { %v170_v59 = vpop.permute.xlu1 %169 }
 0x1f8   :  { %v247_v60 = vpop.permute.xlu0 %246  ;;  %v443_v61 = vpop.permute.xlu1 %442 }
 0x1f9   :  { %v248_v63 = vsel %vm49_vm5, %v247_v60, -inf  ;;  %v444_v6 = vsel %vm50_vm8, %v443_v61, -inf }
 0x1fa   :  { %v252_v7 = vmax.f32 %v248_v63, %v148_v55 }
 0x1fc   :  { %v440_v62 = vpop.permute.xlu0 %439 }
 0x1fd   :  { %v441_v0 = vsel %vm49_vm5, %v440_v62, -inf }
 0x1fe   :  { %v445_v4 = vmax.f32 %v441_v0, %v350_v56 }
 0x200   :  { %v446_v8 = vmax.f32 %v445_v4, %v444_v6  ;;  %v250_v9 = vpop.permute.xlu0 %249 }
 0x201   :  { %v251_v10 = vsel %vm50_vm8, %v250_v9, -inf }
 0x202   :  { %v447_v11 = vmul.f32 %v446_v8, %v257_v57  ;;  %v253_v12 = vmax.f32 %v252_v7, %v251_v10 }
 0x204   :  { %v448_v13 = vadd.f32 %v447_v11, %v262_v58  ;;  %v259_v14 = vmul.f32 %v257_v57, %v253_v12 }
 0x206   :  { %v264_v15 = vadd.f32 %v262_v58, %v259_v14  ;;  %v449_v16 = vsel %vm265_vm13, %v448_v13, %v346_v54 }
 0x207   :  { %v451_v17 = vadd.f32 %v449_v16, %v760_v5 }
 0x208   :  { %v266_v18 = vsel %vm265_vm13, %v264_v15, %v144_v53 }
 0x209   :  { %v268_v19 = vadd.f32 %v266_v18, %v754_v2  ;;  %454 = vst [vmem:[#allocation5 + $0x18] sm:$0xff] %v451_v17 }
 0x20b   :  { %270 = vst [vmem:[#allocation5 + $0x8] sm:$0xff] %v268_v19 }
 0x24d   :  { %v242_v20 = vpop.f32.mrb[2].mxu1  ;;  %v435_v21 = vpop.f32.mrb[2].mxu0 }
 0x24e   :  { %v243_v22 = vadd.f32 %v242_v20, %v170_v59  ;;  %v436_v23 = vadd.f32 %v435_v21, %v170_v59  ;;  %v537_v24 = vpop.f32.mrb[3].mxu1  ;;  %v561_v25 = vpop.f32.mrb[3].mxu0 }
 0x250   :  { %v267_v26 = vadd.f32 %v243_v22, %v752_v1  ;;  %v450_v27 = vadd.f32 %v436_v23, %v756_v3 }
 0x252   :  { %269 = vst [vmem:[#allocation5] sm:$0xff] %v267_v26  ;;  %453 = vst [vmem:[#allocation5 + $0x10] sm:$0xff] %v450_v27 }
 0x253   :  { %672 = shalt.err (!%p669_p12)
}
 0x254   :  { %s673_s29 = scalar_lea.hbm %s852_s6, 512 }
 0x255   :  { %p674_p13 = scmp.ne.s32.totalorder %s852_s6, %s673_s29  ;;  %p677_p0 = scmp.lt.u32.totalorder %s673_s29, %s852_s6 }
 0x257   :  { %p679_p1 = pnand %p677_p0, %p674_p13 }
 0x259   :  { %682 = shalt.err (!%p679_p1)
}
 0x25a   :  { %466 = dma.vmem_to_hbm [thread:$0]  %s461_s5, 512, %s852_s6, [#allocation4], %s688_s7, %s688_s7, %s689_s8  }
 0x25b   :  { %685 = dma.done.wait [#allocation4], 512  }
 0x25c   :  { %686 = vsyncadd [#allocation4], 4294966784 }
 0x25d   :  { %470 = vsyncpa [#allocation3], 1 }
 0x25e   :  { %471 = vsyncpa [#allocation4], 1 }

</bundles_post_ra>
